<compile_context>
chip_gen: v5e
topology: v5e:2x2
jax: 0.10.0
libtpu: 0.0.40
codegen_flags: <defaults>
</compile_context>

<pallas_src>
import functools

import jax
import jax.numpy as jnp
from jax.experimental import pallas as pl
from jax.experimental.pallas import tpu as pltpu


def _round_up(x, m):
    return ((x + m - 1) // m) * m


def _embed_onehot_kernel(ids_ref, table_ref, out_ref, acc_ref, *, vocab_tile):
    """One grid step = one (B, dim_ent) output tile x one (V, dim_ent) vocab tile.

    ids_ref   : (B, 1)  int32   ids for this output block (VMEM)
    table_ref : (V, D)  float   one vocab tile of the embedding table (VMEM)
    out_ref   : (B, D)  float   output tile (resident across the vocab axis)
    acc_ref   : (B, D)  float32 scratch accumulator
    """
    v = pl.program_id(1)

    @pl.when(v == 0)
    def _():
        acc_ref[...] = jnp.zeros_like(acc_ref)

    ids = ids_ref[...]                                            # (B, 1) int32
    cols = v * vocab_tile + jax.lax.broadcasted_iota(
        jnp.int32, (ids.shape[0], vocab_tile), 1)                 # (B, V)
    one_hot = (ids == cols).astype(table_ref.dtype)               # exact 0/1
    acc_ref[...] += jnp.dot(
        one_hot, table_ref[...], preferred_element_type=jnp.float32)

    @pl.when(v == pl.num_programs(1) - 1)
    def _():
        out_ref[...] = acc_ref[...].astype(out_ref.dtype)


def static_embedding(entities, table, *, block_ids=256, max_vocab_tile=1024):
    """Pallas equivalent of StaticEmbedding.forward(entities).

    entities: integer array, arbitrary shape
    table:    (n_ent, dim_ent) embedding table
    returns:  entities.shape + (dim_ent,) in table.dtype
    """
    n_ent, dim_ent = table.shape
    orig_shape = entities.shape
    ids_flat = entities.reshape(-1).astype(jnp.int32)
    n = ids_flat.shape[0]

    if n == 0:  # zero-size grid: handle in the wrapper
        return jnp.zeros(orig_shape + (dim_ent,), dtype=table.dtype)

    # nn.Embedding raises on out-of-range ids; clamp so a bad id cannot turn
    # into a silent out-of-bounds gather on TPU.
    ids_flat = jnp.clip(ids_flat, 0, n_ent - 1)

    # ---- tile sizes --------------------------------------------------------
    # ids per grid step: sublane-dense output block (multiple of 8 rows).
    B = min(_round_up(n, 8), block_ids)
    n_pad = _round_up(n, B)
    ids_2d = jnp.pad(ids_flat, (0, n_pad - n)).reshape(n_pad, 1)

    # vocab rows resident per step: keep the (double-buffered) table tile
    # modest so the kernel fits v7x's 64 MiB VMEM as well as v5e/v6e's 128 MiB.
    bytes_per_row = dim_ent * table.dtype.itemsize
    v_budget = max(8, (8 * 1024 * 1024) // max(bytes_per_row, 1))
    V = min(_round_up(n_ent, 8), _round_up(min(max_vocab_tile, v_budget), 8))
    n_ent_pad = _round_up(n_ent, V)
    table_pad = jnp.pad(table, ((0, n_ent_pad - n_ent), (0, 0)))

    grid = (n_pad // B, n_ent_pad // V)

    # Explicit VMEM budget (table tile double-buffered + out + acc + ids).
    vmem_bytes = (2 * V * dim_ent * table.dtype.itemsize
                  + 2 * B * dim_ent * table.dtype.itemsize
                  + B * dim_ent * 4
                  + 2 * B * 4)
    vmem_limit = int(min(max(2 * vmem_bytes, 32 * 1024 * 1024),
                         64 * 1024 * 1024))

    grid_spec = pltpu.PrefetchScalarGridSpec(
        num_scalar_prefetch=0,
        grid=grid,
        in_specs=[
            # ids for this output block; last dim (=1) is the full array dim.
            pl.BlockSpec((B, 1), lambda i, v: (i, 0)),
            # one vocab tile of the table, full embedding width per block.
            pl.BlockSpec((V, dim_ent), lambda i, v: (v, 0)),
        ],
        out_specs=pl.BlockSpec((B, dim_ent), lambda i, v: (i, 0)),
        scratch_shapes=[pltpu.VMEM((B, dim_ent), jnp.float32)],
    )

    out = pl.pallas_call(
        functools.partial(_embed_onehot_kernel, vocab_tile=V),
        grid_spec=grid_spec,
        out_shape=jax.ShapeDtypeStruct((n_pad, dim_ent), table.dtype),
        compiler_params=pltpu.CompilerParams(
            # id-block axis is fully parallel (v7x 2-TC sharding); vocab axis
            # carries the accumulator, so it must be "arbitrary" and last.
            dimension_semantics=("parallel", "arbitrary"),
            vmem_limit_bytes=vmem_limit,
        ),
    )(ids_2d, table_pad)

    return out[:n].reshape(orig_shape + (dim_ent,))


if __name__ == "__main__":
    key = jax.random.PRNGKey(0)
    k_tab, k_idx = jax.random.split(key)

    n_ent, dim_ent = 64, 128   # small synthetic embedding table
    batch, seq = 2, 8

    # nn.Embedding default init: weights ~ N(0, 1)
    table = jax.random.normal(k_tab, (n_ent, dim_ent), dtype=jnp.float32)
    entities = jax.random.randint(k_idx, (batch, seq), 0, n_ent, dtype=jnp.int32)

    out = static_embedding(entities, table)
    out = jax.block_until_ready(out)

    # sanity check against plain-JAX gather (same semantics as torch embedding)
    ref = table[entities]
    assert out.shape == (batch, seq, dim_ent), out.shape
    assert jnp.allclose(out, ref, atol=1e-5, rtol=1e-5), "mismatch vs reference gather"

    print("KERNEL_OK")
</pallas_src>

<mosaic_0001>
module attributes {stable_mosaic.version = 11 : i64} {
  func.func @_embed_onehot_kernel(%arg0: i32, %arg1: i32, %arg2: memref<16x1xi32, #tpu.memory_space<vmem>>, %arg3: memref<64x128xf32, #tpu.memory_space<vmem>>, %arg4: memref<16x128xf32, #tpu.memory_space<vmem>>, %arg5: memref<16x128xf32, #tpu.memory_space<vmem>>) attributes {dimension_semantics = [#tpu.dimension_semantics<parallel>, #tpu.dimension_semantics<arbitrary>], iteration_bounds = array<i64: 1, 1>, scalar_prefetch = 0 : i64, scratch_operands = 1 : i64, tpu.core_type = #tpu.core_type<tc>, window_params = [{transform_indices = @transform_0, window_bounds = array<i64: 16, 1>}, {transform_indices = @transform_1, window_bounds = array<i64: 64, 128>}, {transform_indices = @transform_2, window_bounds = array<i64: 16, 128>}]} {
    %c0_i32 = arith.constant 0 : i32
    %0 = arith.cmpi eq, %arg1, %c0_i32 : i32
    %1 = arith.extui %0 : i1 to i32
    %c0_i32_0 = arith.constant 0 : i32
    %2 = arith.cmpi ne, %1, %c0_i32_0 : i32
    scf.if %2 {
      %cst_10 = arith.constant 0.000000e+00 : f32
      %20 = vector.broadcast %cst_10 : f32 to vector<16x128xf32>
      %c0_11 = arith.constant 0 : index
      %c0_12 = arith.constant 0 : index
      %21 = vector.load %arg5[%c0_11, %c0_12] : memref<16x128xf32, #tpu.memory_space<vmem>>, vector<16x128xf32>
      tpu.vector_store %arg5[%c0_11, %c0_12], %20 {strides = array<i32>} : memref<16x128xf32, #tpu.memory_space<vmem>>, vector<16x128xf32>,
    } else {
    }
    %c0 = arith.constant 0 : index
    %c0_1 = arith.constant 0 : index
    %3 = vector.load %arg2[%c0, %c0_1] : memref<16x1xi32, #tpu.memory_space<vmem>>, vector<16x1xi32>
    %c64_i32 = arith.constant 64 : i32
    %4 = arith.muli %arg1, %c64_i32 : i32
    %5 = tpu.iota {dimensions = array<i32: 1>} : vector<16x64xi32>
    %6 = vector.broadcast %4 : i32 to vector<16x64xi32>
    %7 = arith.addi %6, %5 : vector<16x64xi32>
    %8 = vector.broadcast %3 : vector<16x1xi32> to vector<16x64xi32>
    %9 = arith.cmpi eq, %8, %7 : vector<16x64xi32>
    %10 = arith.extui %9 : vector<16x64xi1> to vector<16x64xi32>
    %11 = arith.sitofp %10 : vector<16x64xi32> to vector<16x64xf32>
    %c0_2 = arith.constant 0 : index
    %c0_3 = arith.constant 0 : index
    %12 = vector.load %arg5[%c0_2, %c0_3] : memref<16x128xf32, #tpu.memory_space<vmem>>, vector<16x128xf32>
    %c0_4 = arith.constant 0 : index
    %c0_5 = arith.constant 0 : index
    %13 = vector.load %arg3[%c0_4, %c0_5] : memref<64x128xf32, #tpu.memory_space<vmem>>, vector<64x128xf32>
    %cst = arith.constant dense<0.000000e+00> : vector<16x128xf32>
    %14 = tpu.matmul %11, %13, %cst {dimension_numbers = #tpu.dot_dimension_numbers<[1], [0], [0], [1], [0, 0, 1, 1], [], []>} : vector<16x64xf32>, vector<64x128xf32>, vector<16x128xf32> -> vector<16x128xf32>
    %15 = arith.addf %12, %14 : vector<16x128xf32>
    %c0_6 = arith.constant 0 : index
    %c0_7 = arith.constant 0 : index
    %16 = vector.load %arg5[%c0_6, %c0_7] : memref<16x128xf32, #tpu.memory_space<vmem>>, vector<16x128xf32>
    tpu.vector_store %arg5[%c0_6, %c0_7], %15 {strides = array<i32>} : memref<16x128xf32, #tpu.memory_space<vmem>>, vector<16x128xf32>,
    %c0_i32_8 = arith.constant 0 : i32
    %17 = arith.cmpi eq, %arg1, %c0_i32_8 : i32
    %18 = arith.extui %17 : i1 to i32
    %c0_i32_9 = arith.constant 0 : i32
    %19 = arith.cmpi ne, %18, %c0_i32_9 : i32
    scf.if %19 {
      %c0_10 = arith.constant 0 : index
      %c0_11 = arith.constant 0 : index
      %20 = vector.load %arg5[%c0_10, %c0_11] : memref<16x128xf32, #tpu.memory_space<vmem>>, vector<16x128xf32>
      %c0_12 = arith.constant 0 : index
      %c0_13 = arith.constant 0 : index
      %21 = vector.load %arg4[%c0_12, %c0_13] : memref<16x128xf32, #tpu.memory_space<vmem>>, vector<16x128xf32>
      tpu.vector_store %arg4[%c0_12, %c0_13], %20 {strides = array<i32>} : memref<16x128xf32, #tpu.memory_space<vmem>>, vector<16x128xf32>,
    } else {
    }
    return
  }
  func.func @transform_0(%arg0: i32, %arg1: i32) -> (i32, i32) {
    %c0_i32 = arith.constant 0 : i32
    %c0_i32_0 = arith.constant 0 : i32
    return %arg0, %c0_i32 : i32, i32
  }
  func.func @transform_1(%arg0: i32, %arg1: i32) -> (i32, i32) {
    %c0_i32 = arith.constant 0 : i32
    %c0_i32_0 = arith.constant 0 : i32
    return %arg1, %c0_i32 : i32, i32
  }
  func.func @transform_2(%arg0: i32, %arg1: i32) -> (i32, i32) {
    %c0_i32 = arith.constant 0 : i32
    %c0_i32_0 = arith.constant 0 : i32
    return %arg0, %c0_i32 : i32, i32
  }
}

</mosaic_0001>

<bundles_post_ra>
// kernel: tpu_custom_call.1
= control target key start
LH: loop header
LB: loop body
LE: loop exit
PB: predicated region body
PF: predicated region fallthrough
CT: control target
= control target key end

     0   :  { %7 = vsyncpa [#allocation4], 0  ;;  %s233_s0 = inlined_call_operand.vmem [shape: s32[16,1], index: 0, kind: input, shape index: {}]   ;;  %s234_s1 = inlined_call_operand.hbm [shape: f32[64,128], index: 1, kind: input, shape index: {}]   ;;  %s235_s2 = inlined_call_operand.hbm [shape: f32[16,128], index: 2, kind: output, shape index: {}]  }
   0x1   :  { %8 = vsyncpa [#allocation5], 0  ;;  %s15_s11 = sshll.u32 %s234_s1, 4  ;;  %s194_s12 = smov [#allocation3]   ;;  %s16_s11 = int_to_ptr.hbm [resolvable:$true] %s15_s11 }
   0x2   :  { %s17_s13 = sshll.u32 %s194_s12, 4  ;;  %s195_s14 = smov 128   ;;  %s18_s13 = int_to_ptr.vmem [resolvable:$true] %s17_s13 }
   0x3   :  { %s196_s15 = smov 8  }
   0x4   :  { %23 = dma.hbm_to_vmem [thread:$0]  %s16_s11, 1024, %s18_s13, [#allocation4], %s195_s14, %s195_s14, %s196_s15  }
   0x5   :  { %190 = dma.done.wait [#allocation4], 1024  }
   0x6   :  { %191 = vsyncadd [#allocation4], 4294966272  ;;  %v197_v0 = vmov 0   ;;  %v34_v1 = vld [vmem:[%s233_s0] sm:$0xff]  ;;  %v62_v2 = vld [vmem:[#allocation3 + $0x38] sm:$0xff]  ;;  %v37_v11 = vlaneseq  ;;  %vm63_vm0 = vcmask 523264  }
   0x7   :  { %141 = vset.pattern.permute.xlu0 %v197_v0  ;;  %78 = vmatpush.msra.mxu0 %v62_v2  ;;  %v61_v3 = vld [vmem:[#allocation3 + $0x30] sm:$0xff]  ;;  %v60_v4 = vld [vmem:[#allocation3 + $0x28] sm:$0xff]  ;;  %v59_v5 = vld [vmem:[#allocation3 + $0x20] sm:$0xff]  ;;  %v198_v14 = vmov 0.0   ;;  %s110_s22 = sshll.u32 %s235_s2, 4  ;;  %s111_s22 = int_to_ptr.hbm [resolvable:$true] %s110_s22 }
   0x8   :  { %42 = vperm.xlu0 %141, %v34_v1   ;;  %127 = vmatpush.msra.mxu1 %v62_v2  ;;  %v35_v6 = vld [vmem:[%s233_s0 + $0x8] sm:$0xff]  ;;  %v58_v7 = vld [vmem:[#allocation3 + $0x18] sm:$0xff]  ;;  %v57_v8 = vld [vmem:[#allocation3 + $0x10] sm:$0xff]  ;;  %v38_v12 = vand.u32 127, %v37_v11  ;;  %s199_s0 = smov [#allocation6]  }
   0x9   :  { %79 = vmatpush.msra.mxu0 %v61_v3  ;;  %v56_v9 = vld [vmem:[#allocation3 + $0x8] sm:$0xff]  ;;  %v55_v10 = vld [vmem:[#allocation3] sm:$0xff]  ;;  %s108_s19 = sshll.u32 %s199_s0, 4  ;;  %s109_s19 = int_to_ptr.vmem [resolvable:$true] %s108_s19 }
   0xa   :  { %128 = vmatpush.msra.mxu1 %v61_v3 }
   0xb   :  { %80 = vmatpush.msra.mxu0 %v60_v4 }
   0xc   :  { %129 = vmatpush.msra.mxu1 %v60_v4 }
   0xd   :  { %81 = vmatpush.msra.mxu0 %v59_v5 }
   0xe   :  { %130 = vmatpush.msra.mxu1 %v59_v5 }
   0xf   :  { %82 = vmatpush.msra.mxu0 %v58_v7 }
  0x10   :  { %45 = vperm.xlu0 %141, %v35_v6   ;;  %131 = vmatpush.msra.mxu1 %v58_v7 }
  0x11   :  { %83 = vmatpush.msra.mxu0 %v57_v8 }
  0x12   :  { %132 = vmatpush.msra.mxu1 %v57_v8 }
  0x13   :  { %84 = vmatpush.msra.mxu0 %v56_v9 }
  0x14   :  { %133 = vmatpush.msra.mxu1 %v56_v9 }
  0x15   :  { %85 = vmatpush.msra.mxu0 %v55_v10 }
  0x16   :  { %134 = vmatpush.msra.mxu1 %v55_v10 }
  0x7a   :  { %v43_v13 = vpop.permute.xlu0 %42 }
  0x7b   :  { %vm47_vm1 = vcmp.eq.s32.totalorder %v43_v13, %v38_v12 }
  0x7c   :  { %v123_v15 = vsel %vm47_vm1, 1.0, %v198_v14 }
  0x7d   :  { %125 = vmatmul.msk.f32.vlgmr.msra.gmra.mxu0 %vm63_vm0, %v123_v15 }
  0x82   :  { %v46_v16 = vpop.permute.xlu0 %45 }
  0x83   :  { %vm48_vm2 = vcmp.eq.s32.totalorder %v46_v16, %v38_v12 }
  0x84   :  { %v124_v17 = vsel %vm48_vm2, 1.0, %v198_v14 }
  0x85   :  { %126 = vmatmul.msk.f32.vlgmr.msra.gmra.mxu1 %vm63_vm0, %v124_v17 }
  0xfa   :  { %v87_v18 = vpop.f32.mrf.mxu0 }
  0xfb   :  { %102 = vst [vmem:[#allocation6] sm:$0xff] %v87_v18 }
 0x102   :  { %v90_v19 = vpop.f32.mrf.mxu1 }
 0x103   :  { %103 = vst [vmem:[#allocation6 + $0x8] sm:$0xff] %v90_v19 }
 0x104   :  { %116 = dma.vmem_to_hbm [thread:$0]  %s109_s19, 256, %s111_s22, [#allocation5], %s195_s14, %s195_s14, %s196_s15  }
 0x105   :  { %192 = dma.done.wait [#allocation5], 256  }
 0x106   :  { %193 = vsyncadd [#allocation5], 4294967040 }
 0x107   :  { %121 = vsyncpa [#allocation4], 1 }
 0x108   :  { %122 = vsyncpa [#allocation5], 1 }

</bundles_post_ra>
